<compile_context>
chip_gen: v5e
topology: v5e:2x2
jax: 0.10.0
libtpu: 0.0.40
codegen_flags: <defaults>
</compile_context>

<pallas_src>
import jax
import jax.numpy as jnp
from jax.experimental import pallas as pl
from jax.experimental.pallas import tpu as pltpu


# ------------------------------------------------------------------ kernels

def _score_kernel(tn_ref, v_ref, o_ref):
    # tn_ref:(1,K,C) pre-normalized text   v_ref:(1,TP,C)   o_ref:(1,K,TP)
    tn = tn_ref[0]                                   # (K, C), v dtype
    v = v_ref[0]                                     # (TP, C), native dtype
    eps2 = jnp.float32(1e-24)                        # (F.normalize eps=1e-12)**2

    # Sum of squares over C without large f32 temporaries: square in native
    # dtype, accumulate in f32 on the MXU. Ones-row LHS means only one row is
    # streamed and the result lands lane-oriented (1, TP) -> no relayout
    # before the column scale of the (K, TP) output.
    sq = v * v                                                         # (TP, C)
    ones_row = jnp.ones((1, v.shape[1]), dtype=v.dtype)                # (1, C)
    ss = jax.lax.dot_general(ones_row, sq, (((1,), (1,)), ((), ())),
                             preferred_element_type=jnp.float32)       # (1, TP)
    inv_v = jax.lax.rsqrt(jnp.maximum(ss, eps2))                       # (1, TP)

    # Raw scores on the MXU: contraction over C, output (K, TP) lane-dense.
    # t is already L2-normalized, so one post-scale by inv_v finishes the job.
    raw = jax.lax.dot_general(tn, v, (((1,), (1,)), ((), ())),
                              preferred_element_type=jnp.float32)      # (K, TP)
    o_ref[0] = (raw * inv_v).astype(o_ref.dtype)


def _upsample_kernel(s_ref, wh_ref, wwT_ref, o_ref):
    # s_ref:(1,TK,H,W)  wh_ref:(Ho,H)  wwT_ref:(W,Wo)  o_ref:(1,TK,Ho,Wo)
    wh = wh_ref[...]                                 # (Ho, H) f32
    wwT = wwT_ref[...]                               # (W, Wo) f32, pre-transposed
    tk = s_ref.shape[1]
    # Static per-class unroll (TK kept small by the wrapper): two standard-
    # orientation matmuls per class, no (TK,Ho,H) broadcast of wh in VMEM, and
    # per-class f32 temporaries only.  The TK small matmuls underfill the MXU
    # but stay hidden under the 16x-sized HBM output write.
    for k in range(tk):
        sk = s_ref[0, k].astype(jnp.float32)                            # (H, W)
        cols = jnp.dot(sk, wwT, preferred_element_type=jnp.float32)     # (H, Wo)
        outk = jnp.dot(wh, cols, preferred_element_type=jnp.float32)    # (Ho, Wo)
        o_ref[0, k] = outk.astype(o_ref.dtype)
    # NOTE: the (..., Ho, Wo) block is lane-dense whenever Wo=4W is a multiple
    # of 128 (true for realistic feature maps, W>=32); flattening to (K, Ho*Wo)
    # for tiny maps would itself force an in-kernel relayout, so it is skipped.


# ------------------------------------------------------------------ VMEM / tiling helpers

def _vmem_budget_and_limit():
    """Per-generation VMEM plan: request ~3/4 of physical VMEM as the scoped
    limit and target ~half of that as the pipelined working set
    (v5e/v6e: 128 MiB physical -> 96/48 MiB, v7x: 64 MiB -> 48/24 MiB)."""
    phys = 64 * 1024 * 1024                       # conservative fallback (v7x per-TC)
    try:
        info = pltpu.get_tpu_info()
        cap = int(getattr(info, "vmem_capacity_bytes", 0) or 0)
        if cap > 0:
            phys = cap
    except Exception:
        pass
    limit = (phys * 3) // 4
    budget = limit // 2
    return budget, limit


def _choose_aligned_tile(dim, target, align):
    """Largest `align`-multiple divisor of `dim` <= target, else full `dim`."""
    if dim <= target:
        return dim
    t = (target // align) * align
    while t >= align:
        if dim % t == 0:
            return t
        t -= align
    return dim


def _choose_divisor(dim, target):
    """Largest divisor of `dim` <= target."""
    if dim <= target:
        return dim
    for t in range(int(target), 0, -1):
        if dim % t == 0:
            return t
    return dim


def _plan_p_tiling(P, tp_target):
    """Return (P_padded, TP). If P has no 128-aligned divisor <= target, pad P
    up to a multiple of 128 instead of falling back to one giant full-P tile
    (which could blow scoped VMEM for large, awkward P)."""
    TP = _choose_aligned_tile(P, tp_target, 128)
    if TP == P and P > tp_target:
        P_pad = ((P + 127) // 128) * 128
        TP = _choose_aligned_tile(P_pad, tp_target, 128)
        return P_pad, TP
    return P, TP


# ------------------------------------------------------------------ wrappers

def score_map(t_n, v, *, out_dtype=None, vmem_budget=None, vmem_limit=None):
    """t_n:(B,K,C) L2-normalized text, v:(B,P,C) -> (B,K,P) scores.

    score[b,k,p] = <t_n[b,k], v[b,p]/||v[b,p]||>  (== einsum('bchw,bkc->bkhw'))
    """
    B, P, C = v.shape
    _, K, _ = t_n.shape
    out_dtype = out_dtype or v.dtype
    if vmem_budget is None or vmem_limit is None:
        bud, lim = _vmem_budget_and_limit()
        vmem_budget = vmem_budget if vmem_budget is not None else bud
        vmem_limit = vmem_limit if vmem_limit is not None else lim

    v_isz = jnp.dtype(v.dtype).itemsize
    o_isz = jnp.dtype(out_dtype).itemsize
    # Per-token working set: double-buffered v tile + native-dtype square temp
    # (+ margin for a possible matmul operand copy) + double-buffered output.
    bytes_per_tok = 4 * C * v_isz + 2 * K * o_isz
    tp_target = max(128, (vmem_budget // bytes_per_tok) // 128 * 128)
    P_pad, TP = _plan_p_tiling(P, tp_target)

    # Keep at least 2 grid steps so the v7x megacore split has work to balance.
    if B * (P_pad // TP) < 2 and P_pad >= 256:
        tp2 = _choose_aligned_tile(P_pad, max(128, TP // 2), 128)
        if tp2 < TP:
            TP = tp2

    if P_pad != P:
        v = jnp.pad(v, ((0, 0), (0, P_pad - P), (0, 0)))

    out = pl.pallas_call(
        _score_kernel,
        out_shape=jax.ShapeDtypeStruct((B, K, P_pad), out_dtype),
        grid=(B, P_pad // TP),
        in_specs=[pl.BlockSpec((1, K, C), lambda b, p: (b, 0, 0)),
                  pl.BlockSpec((1, TP, C), lambda b, p: (b, p, 0))],
        out_specs=pl.BlockSpec((1, K, TP), lambda b, p: (b, 0, p)),
        compiler_params=pltpu.CompilerParams(
            dimension_semantics=("parallel", "parallel"),
            vmem_limit_bytes=int(vmem_limit)),
    )(t_n, v)
    return out[:, :, :P] if P_pad != P else out


def _bilinear_matrix(in_size, scale):
    """Row-interpolation matrix for F.interpolate(mode='bilinear', align_corners=False)."""
    out_size = in_size * scale
    dst = jnp.arange(out_size, dtype=jnp.float32)
    src = (dst + 0.5) / scale - 0.5
    src = jnp.maximum(src, 0.0)                      # PyTorch clamps negatives to 0
    i0 = jnp.minimum(jnp.floor(src).astype(jnp.int32), in_size - 1)
    i1 = jnp.minimum(i0 + 1, in_size - 1)
    frac = src - i0.astype(jnp.float32)
    w = (jax.nn.one_hot(i0, in_size, dtype=jnp.float32) * (1.0 - frac)[:, None]
         + jax.nn.one_hot(i1, in_size, dtype=jnp.float32) * frac[:, None])
    return w                                         # (out_size, in_size)


def bilinear_upsample_x4(score, *, out_dtype=None, vmem_budget=None,
                         vmem_limit=None, max_unroll=8):
    """score:(B,K,H,W) -> (B,K,4H,4W), bilinear, align_corners=False."""
    B, K, H, W = score.shape
    Ho, Wo = 4 * H, 4 * W
    out_dtype = out_dtype or score.dtype
    if vmem_budget is None or vmem_limit is None:
        bud, lim = _vmem_budget_and_limit()
        vmem_budget = vmem_budget if vmem_budget is not None else bud
        vmem_limit = vmem_limit if vmem_limit is not None else lim

    s_isz = jnp.dtype(score.dtype).itemsize
    o_isz = jnp.dtype(out_dtype).itemsize
    per_class = (2 * H * W * s_isz            # double-buffered input block
                 + 2 * Ho * Wo * o_isz        # double-buffered output block
                 + 4 * (H * Wo + Ho * Wo))    # per-class f32 temporaries
    tk_target = max(1, min(max_unroll, vmem_budget // max(1, per_class)))
    TK = _choose_divisor(K, tk_target)

    wh = _bilinear_matrix(H, 4)               # (Ho, H)
    wwT = _bilinear_matrix(W, 4).T            # (W, Wo) pre-transposed -> standard matmul

    return pl.pallas_call(
        _upsample_kernel,
        out_shape=jax.ShapeDtypeStruct((B, K, Ho, Wo), out_dtype),
        grid=(B, K // TK),
        in_specs=[pl.BlockSpec((1, TK, H, W), lambda b, k: (b, k, 0, 0)),
                  pl.BlockSpec((Ho, H), lambda b, k: (0, 0)),
                  pl.BlockSpec((W, Wo), lambda b, k: (0, 0))],
        out_specs=pl.BlockSpec((1, TK, Ho, Wo), lambda b, k: (b, k, 0, 0)),
        compiler_params=pltpu.CompilerParams(
            dimension_semantics=("parallel", "parallel"),
            vmem_limit_bytes=int(vmem_limit)),
    )(score, wh, wwT)


def prompt_self_a_head(v_tokens, text_embeddings, text_diff, gamma, *,
                       score_dtype=None, out_dtype=None):
    """Pallas implementation of the PromptSelfA forward tail.

    v_tokens:        (B, P, C)  hierarchical self-attn decoder output
    text_embeddings: (K, C)     CLIP text embeddings (batch-shared)
    text_diff:       (B, K, C)  context-decoder output
    gamma:           (C,)       residual scale
    returns          (B, K, 4H, 4W) score map, H = W = sqrt(P)
    """
    B, P, C = v_tokens.shape
    H = W = int(round(P ** 0.5))
    assert H * W == P, f"token count P={P} must be a perfect square"

    # t = text_embeddings + gamma * text_diff, L2-normalized over C.  Computed
    # once in the wrapper (B*K*C is tiny) so the P-tiled kernel body does no
    # per-tile recompute of t / rsqrt / broadcast multiplies.
    t = (text_embeddings[None, :, :].astype(jnp.float32)
         + gamma[None, None, :].astype(jnp.float32) * text_diff.astype(jnp.float32))
    inv_t = jax.lax.rsqrt(jnp.maximum(jnp.sum(t * t, axis=-1, keepdims=True),
                                      jnp.float32(1e-24)))
    t_n = (t * inv_t).astype(v_tokens.dtype)                          # (B, K, C)

    # Score intermediate follows the v dtype (bf16 in -> bf16 intermediate,
    # halving its HBM write + the upsample's read).
    score_dtype = score_dtype or v_tokens.dtype
    s = score_map(t_n, v_tokens, out_dtype=score_dtype)               # (B, K, P)
    s = s.reshape(B, -1, H, W)                                        # NCHW score map
    # TODO(synk): the x4 upsample stays a separate kernel (HBM roundtrip of the
    # small score map) rather than being fused into the score kernel, since the
    # height interpolation needs neighboring rows across P-tiles.
    return bilinear_upsample_x4(s, out_dtype=out_dtype)               # (B, K, 4H, 4W)


# ------------------------------------------------------------------ main

if __name__ == "__main__":
    # Small, shape-consistent config: dec_dim=text_dim=32, 4 classes, 8x8 token grid.
    B, H, W, C, K = 2, 8, 8, 32, 4
    P = H * W

    key = jax.random.PRNGKey(0)
    kv, kt, kd = jax.random.split(key, 3)

    # TODO(synk): SwinTransformer, CLIPTextContextEncoder(+tokenize), ContextDecoder
    # and HierarchicalSelfA are external pretrained submodules not defined in the
    # reference snippet; their outputs are synthesized deterministically here.
    v = jax.random.normal(kv, (B, P, C), dtype=jnp.float32)
    text_emb = jax.random.normal(kt, (K, C), dtype=jnp.float32)
    text_diff = jax.random.normal(kd, (B, K, C), dtype=jnp.float32)
    gamma = jnp.full((C,), 1e-4, dtype=jnp.float32)

    out = prompt_self_a_head(v, text_emb, text_diff, gamma)
    jax.block_until_ready(out)
    assert out.shape == (B, K, 4 * H, 4 * W)

    # Pure-JAX reference for a correctness sanity check (f32 datapath).
    t = text_emb[None] + gamma[None, None, :] * text_diff
    v_n = v / jnp.maximum(jnp.linalg.norm(v, axis=-1, keepdims=True), 1e-12)
    t_n = t / jnp.maximum(jnp.linalg.norm(t, axis=-1, keepdims=True), 1e-12)
    s_ref = jnp.einsum('bkc,bpc->bkp', t_n, v_n).reshape(B, K, H, W)
    wh, ww = _bilinear_matrix(H, 4), _bilinear_matrix(W, 4)
    up_ref = jnp.einsum('oh,bkhw,pw->bkop', wh, s_ref, ww)
    assert jnp.allclose(out, up_ref, rtol=1e-3, atol=1e-3), \
        float(jnp.max(jnp.abs(out - up_ref)))

    print("KERNEL_OK")
</pallas_src>

<mosaic_0001>
module attributes {stable_mosaic.version = 11 : i64} {
  func.func @_score_kernel(%arg0: i32, %arg1: i32, %arg2: memref<1x4x32xf32, #tpu.memory_space<vmem>>, %arg3: memref<1x64x32xf32, #tpu.memory_space<vmem>>, %arg4: memref<1x4x64xf32, #tpu.memory_space<vmem>>) attributes {dimension_semantics = [#tpu.dimension_semantics<parallel>, #tpu.dimension_semantics<parallel>], iteration_bounds = array<i64: 2, 1>, scalar_prefetch = 0 : i64, scratch_operands = 0 : i64, tpu.core_type = #tpu.core_type<tc>, window_params = [{transform_indices = @transform_0, window_bounds = array<i64: 1, 4, 32>}, {transform_indices = @transform_1, window_bounds = array<i64: 1, 64, 32>}, {transform_indices = @transform_2, window_bounds = array<i64: 1, 4, 64>}]} {
    %c0 = arith.constant 0 : index
    %c0_0 = arith.constant 0 : index
    %c0_1 = arith.constant 0 : index
    %0 = vector.load %arg2[%c0, %c0_0, %c0_1] : memref<1x4x32xf32, #tpu.memory_space<vmem>>, vector<1x4x32xf32>
    %1 = vector.shape_cast %0 : vector<1x4x32xf32> to vector<4x32xf32>
    %c0_2 = arith.constant 0 : index
    %c0_3 = arith.constant 0 : index
    %c0_4 = arith.constant 0 : index
    %2 = vector.load %arg3[%c0_2, %c0_3, %c0_4] : memref<1x64x32xf32, #tpu.memory_space<vmem>>, vector<1x64x32xf32>
    %3 = vector.shape_cast %2 : vector<1x64x32xf32> to vector<64x32xf32>
    %4 = arith.mulf %3, %3 : vector<64x32xf32>
    %cst = arith.constant 1.000000e+00 : f32
    %5 = vector.broadcast %cst : f32 to vector<1x32xf32>
    %cst_5 = arith.constant dense<0.000000e+00> : vector<1x64xf32>
    %6 = tpu.matmul %5, %4, %cst_5 {dimension_numbers = #tpu.dot_dimension_numbers<[1], [1], [0], [0], [0, 0, 1, 0], [], []>} : vector<1x32xf32>, vector<64x32xf32>, vector<1x64xf32> -> vector<1x64xf32>
    %cst_6 = arith.constant 1.000000e-24 : f32
    %7 = vector.broadcast %cst_6 : f32 to vector<1x64xf32>
    %8 = arith.maximumf %6, %7 : vector<1x64xf32>
    %9 = math.rsqrt %8 : vector<1x64xf32>
    %cst_7 = arith.constant dense<0.000000e+00> : vector<4x64xf32>
    %10 = tpu.matmul %1, %3, %cst_7 {dimension_numbers = #tpu.dot_dimension_numbers<[1], [1], [0], [0], [0, 0, 1, 0], [], []>} : vector<4x32xf32>, vector<64x32xf32>, vector<4x64xf32> -> vector<4x64xf32>
    %11 = vector.broadcast %9 : vector<1x64xf32> to vector<4x64xf32>
    %12 = arith.mulf %10, %11 : vector<4x64xf32>
    %c0_8 = arith.constant 0 : index
    %c0_9 = arith.constant 0 : index
    %c0_10 = arith.constant 0 : index
    %13 = vector.load %arg4[%c0_8, %c0_9, %c0_10] : memref<1x4x64xf32, #tpu.memory_space<vmem>>, vector<1x4x64xf32>
    %14 = vector.shape_cast %13 : vector<1x4x64xf32> to vector<4x64xf32>
    %15 = vector.shape_cast %12 : vector<4x64xf32> to vector<1x4x64xf32>
    tpu.vector_store %arg4[%c0_8, %c0_9, %c0_10], %15 {strides = array<i32>} : memref<1x4x64xf32, #tpu.memory_space<vmem>>, vector<1x4x64xf32>,
    return
  }
  func.func @transform_0(%arg0: i32, %arg1: i32) -> (i32, i32, i32) {
    %c0_i32 = arith.constant 0 : i32
    %c0_i32_0 = arith.constant 0 : i32
    %c0_i32_1 = arith.constant 0 : i32
    return %arg0, %c0_i32, %c0_i32_0 : i32, i32, i32
  }
  func.func @transform_1(%arg0: i32, %arg1: i32) -> (i32, i32, i32) {
    %c0_i32 = arith.constant 0 : i32
    %c0_i32_0 = arith.constant 0 : i32
    return %arg0, %arg1, %c0_i32 : i32, i32, i32
  }
  func.func @transform_2(%arg0: i32, %arg1: i32) -> (i32, i32, i32) {
    %c0_i32 = arith.constant 0 : i32
    %c0_i32_0 = arith.constant 0 : i32
    return %arg0, %c0_i32, %arg1 : i32, i32, i32
  }
}

</mosaic_0001>

<bundles_post_ra>
// kernel: tpu_custom_call.1
= control target key start
LH: loop header
LB: loop body
LE: loop exit
PB: predicated region body
PF: predicated region fallthrough
CT: control target
= control target key end

     0   :  { %7 = vsyncpa [#allocation3], 0  ;;  %s727_s0 = inlined_call_operand.vmem [shape: f32[2,4,32], index: 0, kind: input, shape index: {}]   ;;  %s728_s1 = inlined_call_operand.vmem [shape: f32[2,64,32], index: 1, kind: input, shape index: {}]   ;;  %s729_s2 = inlined_call_operand.hbm [shape: f32[2,4,64], index: 2, kind: output, shape index: {}]  }
   0x1   :  { %9 = vsyncpa [#allocation3 + $0x1], 0  ;;  %s605_s9 = smov 0   ;;  %s607_s10 = smov 0  }
   0x2   :  { %s609_s11 = smov 0   ;;  %s611_s12 = smov 0  }
   0x3   :  { %s613_s13 = smov 0   ;;  %s615_s14 = smov 0  }
   0x4 LB: > { %s419_s15 = sadd.s32 4294967295, %s587_s14   ;;  %s420_s16 = sadd.s32 4294967294, %s587_s14   ;;  %s587_s14 = sphi %s615_s14, %s15_s14   ;;  %s583_s13 = sphi %s613_s13, %s736_s13   ;;  %s579_s12 = sphi %s611_s12, %s735_s12   ;;  %s575_s11 = sphi %s609_s11, %s734_s11   ;;  %s571_s10 = sphi %s607_s10, %s733_s10   ;;  %s567_s9 = sphi %s605_s9, %s732_s9  }
   0x5   : > { %s27_s17 = sadd.s32 1, %s583_s13  ;;  %s90_s18 = sadd.s32 1, %s575_s11 }
   0x6   : > { %p29_p0 = scmp.ge.s32.totalorder %s27_s17, 2  ;;  %p100_p1 = scmp.ne.s32.totalorder %s575_s11, %s571_s10 }
   0x7   : > { %p101_p2 = scmp.eq.s32.totalorder %s419_s15, 1  ;;  %p106_p3 = scmp.ne.s32.totalorder %s571_s10, %s567_s9 }
   0x8   : > { %s738_s17 = smov (%p29_p0, %s27_s17), 0  ;;  %p107_p5 = scmp.eq.s32.totalorder %s420_s16, 1 }
   0x9   : > { %p645_p4 = por %p101_p2, %p100_p1  ;;  %s85_s20 = ssub.s32 %s583_s13, %s738_s17 }
   0xa   : > { %p423_p6 = scmp.ge.s32.totalorder %s587_s14, 1  ;;  %p88_p7 = scmp.eq.s32.totalorder %s85_s20, 0 }
   0xb   : > { %p652_p8 = por %p107_p5, %p106_p3  ;;  %p145_p9 = scmp.lt.s32.totalorder %s587_s14, 3 }
   0xc   : > { %s658_s22 = scalar_select %p88_p7, %s575_s11, %s90_s18  }
   0xd   : > { %p146_p10 = pnand %p423_p6, %p145_p9 }
   0xe   : > { %p175_p11 = scmp.lt.s32.totalorder (!%p146_p10), %s579_s12, 1  ;;  %s172_s4 = sand.u32 (!%p146_p10), 1, %s571_s10  }
   0xf   : > { %149 = sbr.rel (%p146_p10) target bundleno = 211 (0xd3), region = 28  ;;  %s424_s5 = sshll.u32 (!%p146_p10), %s172_s4, 2 }
  0x10   : > { %s447_s6 = sshll.u32 (!%p146_p10), %s579_s12, 2  ;;  %s174_s16 = scalar_lea.vmem (!%p146_p10), [#allocation2], %s424_s5 }
  0x11   : > { %s328_s15 = scalar_lea.hbm (!%p146_p10), %s729_s2, %s447_s6  ;;  %s330_s18 = sshll.u32 (!%p146_p10), %s174_s16, 4  ;;  %s331_s18 = int_to_ptr.vmem [resolvable:$true] %s330_s18 }
  0x12   : > { %s332_s20 = sshll.u32 (!%p146_p10), %s328_s15, 4  ;;  %s333_s20 = int_to_ptr.hbm [resolvable:$true] %s332_s20 }
  0x14   : > { %s662_s23 = scalar_select %p175_p11, %s579_s12, 1  ;;  %vm206_vm0 = vcmask 261120   ;;  %v589_v17 = vmov 1.0   ;;  %vm314_vm4 = vcmask 519168  }
  0x15   : > { %s317_s12 = scalar_lea.sflag [#allocation3], %s172_s4 }
  0x16   : > { %s450_s24 = sshll.u32 %s662_s23, 6  ;;  %s425_s28 = sshll.u32 %s662_s23, 2 }
  0x17   : > { %s187_s27 = scalar_lea.vmem %s728_s1, %s450_s24  ;;  %s178_s3 = scalar_lea.vmem %s727_s0, %s425_s28 }
  0x18   : > { %v197_v0 = vld [vmem:[%s187_s27 + $0x38] sm:$0xff]  ;;  %v196_v1 = vld [vmem:[%s187_s27 + $0x30] sm:$0xff]  ;;  %v195_v4 = vld [vmem:[%s187_s27 + $0x28] sm:$0xff]  ;;  %s523_s23 = sshra.s32 %s333_s20, 4  ;;  %s524_s23 = int_to_ptr.hbm [resolvable:$true] %s523_s23 }
  0x19   : > { %v205_v2 = vmul.f32 %v197_v0, %v197_v0  ;;  %437 = vmatpush.xpose.msk.msra.mxu1 %vm206_vm0, %v197_v0  ;;  %v204_v3 = vmul.f32 %v196_v1, %v196_v1  ;;  %v203_v5 = vmul.f32 %v195_v4, %v195_v4  ;;  %v194_v6 = vld [vmem:[%s187_s27 + $0x20] sm:$0xff]  ;;  %v193_v8 = vld [vmem:[%s187_s27 + $0x18] sm:$0xff]  ;;  %v192_v10 = vld [vmem:[%s187_s27 + $0x10] sm:$0xff]  ;;  %s525_s24 = scalar_lea.hbm %s524_s23, 4  ;;  %p530_p1 = scmp.lt.s32.totalorder %s524_s23, %s729_s2 }
  0x1a   : > { %v202_v7 = vmul.f32 %v194_v6, %v194_v6  ;;  %v201_v9 = vmul.f32 %v193_v8, %v193_v8  ;;  %v200_v11 = vmul.f32 %v192_v10, %v192_v10  ;;  %v191_v12 = vld [vmem:[%s187_s27 + $0x8] sm:$0xff]  ;;  %v190_v14 = vld [vmem:[%s187_s27] sm:$0xff]  ;;  %p526_p12 = scmp.ne.s32.totalorder %s524_s23, %s525_s24  ;;  %s529_s27 = scalar_lea.hbm %s729_s2, 8 }
  0x1b   : > { %428 = vmatpush.xpose.msk.msra.mxu0 %vm206_vm0, %v205_v2  ;;  %v199_v13 = vmul.f32 %v191_v12, %v191_v12  ;;  %v198_v15 = vmul.f32 %v190_v14, %v190_v14  ;;  %v189_v16 = vld [vmem:[%s178_s3] sm:$0xf]  ;;  %p531_p2 = scmp.lt.s32.totalorder %s529_s27, %s525_s24 }
  0x1c   : > { %p527_p13 = pnand %p526_p12, %p645_p4 }
  0x1d   : > { %438 = vmatpush.xpose.msk.msra.mxu1 %vm206_vm0, %v196_v1  ;;  %p532_p3 = por %p531_p2, %p530_p1 }
  0x1e   : > { %p528_p0 = pneg %p527_p13 }
  0x1f   : > { %429 = vmatpush.xpose.msk.msra.mxu0 %vm206_vm0, %v204_v3 }
  0x20   : > { %p533_p5 = pnand %p532_p3, %p528_p0 }
  0x21   : > { %439 = vmatpush.xpose.msk.msra.mxu1 %vm206_vm0, %v195_v4 }
  0x23   : > { %430 = vmatpush.xpose.msk.msra.mxu0 %vm206_vm0, %v203_v5 }
  0x25   : > { %440 = vmatpush.xpose.msk.msra.mxu1 %vm206_vm0, %v194_v6 }
  0x27   : > { %431 = vmatpush.xpose.msk.msra.mxu0 %vm206_vm0, %v202_v7 }
  0x29   : > { %441 = vmatpush.xpose.msk.msra.mxu1 %vm206_vm0, %v193_v8 }
  0x2b   : > { %432 = vmatpush.xpose.msk.msra.mxu0 %vm206_vm0, %v201_v9 }
  0x2d   : > { %442 = vmatpush.xpose.msk.msra.mxu1 %vm206_vm0, %v192_v10 }
  0x2f   : > { %433 = vmatpush.xpose.msk.msra.mxu0 %vm206_vm0, %v200_v11 }
  0x31   : > { %443 = vmatpush.xpose.msk.msra.mxu1 %vm206_vm0, %v191_v12 }
  0x33   : > { %434 = vmatpush.xpose.msk.msra.mxu0 %vm206_vm0, %v199_v13 }
  0x35   : > { %444 = vmatpush.xpose.msk.msra.mxu1 %vm206_vm0, %v190_v14 }
  0x37   : > { %435 = vmatpush.xpose.msk.msra.mxu0 %vm206_vm0, %v198_v15 }
  0x38   : > { %445 = vmatmul.msk.f32.vlgmr.msra.gmra.mxu1 %vm206_vm0, %v189_v16 }
  0x3a   : > { %436 = vmatmul.msk.f32.vlgmr.msra.gmra.mxu0 %vm206_vm0, %v589_v17 }
  0xb5   : > { %v309_v27 = vpop.f32.mrf.mxu1 }
  0xb7   : > { %v251_v18 = vpop.f32.mrf.mxu0 }
  0xb8   : > { %v254_v19 = vmax.f32 %v251_v18, 1e-24 }
  0xba   : > { %507 = vrsqrt.f32 %v254_v19  ;;  %vm261_vm2 = vweird.f32 %v254_v19 }
  0xc0   : > { %v508_v20 = vpop.eup %507 }
  0xc1   : > { %v256_v21 = vmul.f32 %v508_v20, %v254_v19  ;;  %vm262_vm1 = vweird.f32 %v508_v20 }
  0xc2   : > { %vm263_vm3 = vmor %vm261_vm2, %vm262_vm1 }
  0xc3   : > { %v257_v22 = vmul.f32 %v508_v20, %v256_v21 }
  0xc5   : > { %v258_v23 = vmul.f32 0.5, %v257_v22 }
  0xc7   : > { %v259_v24 = vsub.f32 1.5, %v258_v23 }
  0xc9   : > { %v260_v25 = vmul.f32 %v508_v20, %v259_v24 }
  0xcb   : > { %v264_v26 = vsel %vm263_vm3, %v508_v20, %v260_v25 }
  0xcc   : > { %v312_v28 = vperm.slane %v264_v26, 0 }
  0xce   : > { %v313_v29 = vmul.f32 %v312_v28, %v309_v27 }
  0xd0   : > { %315 = vst.msk [vmem:[%s174_s16] sm:$0xf] %vm314_vm4, %v313_v29 }
  0xd1   : > { %536 = shalt.err (!%p533_p5)
}
  0xd2   : > { %451 = dma.vmem_to_hbm [thread:$0]  (%p645_p4), %s331_s18, 64, %s333_s20, %s317_s12  }
  0xd3 PF: > { %p457_p6 = scmp.ge.s32.totalorder %s587_s14, 2  ;;  %s344_s30 = sand.u32 1, %s567_s9  }
  0xd4   : > { %s345_s3 = scalar_lea.sflag [#allocation3], %s344_s30 }
  0xd5   : > { %p454_p7 = pnand %p457_p6, %p652_p8 }
  0xd7   : > { %p455_p9 = pneg %p454_p7 }
  0xd9   : > { %562 = dma.done.wait (%p455_p9), %s345_s3, 64  }
  0xda   : > { %564 = vsyncadd (%p455_p9), %s345_s3, 4294967232  ;;  %s15_s14 = sadd.s32 1, %s587_s14   ;;  %s732_s9 = smov %s571_s10 }
  0xdb   : > { %p12_p10 = scmp.ge.s32.totalorder %s15_s14, 4   ;;  %s733_s10 = smov %s575_s11 }
  0xdc   : > { %s734_s11 = smov %s658_s22  ;;  %s735_s12 = smov %s583_s13 }
  0xdd   : > { %s736_s13 = smov %s738_s17  ;;  %14 = sbr.rel (!%p12_p10) target bundleno = 4 (0x4), region = 66 }
  0xe2   :  { %351 = vsyncpa [#allocation3], 1 }
  0xe3   :  { %353 = vsyncpa [#allocation3 + $0x1], 1 }

</bundles_post_ra>
